<compile_context>
chip_gen: v7x
topology: tpu7x:2x2x1
jax: 0.10.0
libtpu: 0.0.40
codegen_flags: <defaults>
</compile_context>

<pallas_src>
import jax
import jax.numpy as jnp
from jax import lax
from jax.experimental import pallas as pl
from jax.experimental.pallas import tpu as pltpu


def _mlp_kernel(x_ref, w1_ref, w2_ref, w3c_ref, bias_ref, o_ref):
    h1_dim = w1_ref.shape[0]          # 32
    h2_dim = w2_ref.shape[0]          # 64

    x_blk = x_ref[...]                # (tb, D_in) -- native layout, no wrapper transpose
    b = bias_ref[...]                 # (97, 1) packed [b1; b2; b3] column

    # fc1 + relu: contract over D_in; batch lands on the lane axis of the result.
    #   (32, D_in) . (tb, D_in)^T -> (32, tb)   (transpose handled on the MXU/XLU
    #   operand feed in VMEM, not as a separate HBM pass)
    h1 = lax.dot_general(w1_ref[...], x_blk, (((1,), (1,)), ((), ())),
                         preferred_element_type=jnp.float32)
    h1 = jnp.maximum(h1 + b[:h1_dim, :], 0.0)

    # fc2 + relu : (64, 32) @ (32, tb) -> (64, tb)
    h2 = jnp.dot(w2_ref[...], h1, preferred_element_type=jnp.float32)
    h2 = jnp.maximum(h2 + b[h1_dim:h1_dim + h2_dim, :], 0.0)

    # fc3 (64 -> 1): VPU broadcast-mul + XLU sublane reduce (no M=1 MXU matmul);
    # result stays lane-dense as (1, tb).
    h3 = jnp.sum(w3c_ref[...] * h2, axis=0, keepdims=True)
    h3 = h3 + b[h1_dim + h2_dim:, :]

    # sigmoid(x) = 0.5*(tanh(x/2)+1): single EUP op (slot is otherwise idle),
    # accurate and free of exp-overflow / approx-reciprocal edge cases.
    o_ref[...] = 0.5 * (jnp.tanh(0.5 * h3) + 1.0)


def neural_net_forward(x, w1, b1, w2, b2, w3, b3, *, tb=512):
    """Forward pass of the MLP.

    x : (B, D_in) f32 (native layout; no transpose/pad done in the wrapper)
    Torch-layout params: w1 (32, D_in), b1 (32,), w2 (64, 32), b2 (64,),
                         w3 (1, 64),   b3 (1,)
    Returns (B, 1) f32 sigmoid probabilities.
    """
    B, D_in = x.shape
    H1 = w1.shape[0]   # 32
    H2 = w2.shape[0]   # 64

    # Batch tile (lane width):
    #  * multiple of 128 lanes,
    #  * capped at 512 so h1/h2 f32 intermediates stay near the vreg file (no spills),
    #  * capped so the grid has >= 2 tiles whenever B > 128 (v7x: one tile per
    #    TensorCore; all gens: DMA/compute overlap instead of a single grid step).
    tb = min(max(tb, 128), 512)
    two_tile_cap = max(128, ((pl.cdiv(B, 2) + 127) // 128) * 128)
    tb = min(tb, two_tile_cap)
    n_tiles = pl.cdiv(B, tb)          # partial last block handled by Pallas masking
    Bp = n_tiles * tb

    # Pack the three biases into one column operand (one tiny DMA, static in-kernel slices).
    bias = jnp.concatenate([b1, b2, b3]).reshape(H1 + H2 + 1, 1).astype(jnp.float32)
    # (64, 1) column for the VPU-mul + sublane-reduce last layer.
    w3c = w3.reshape(H2, 1).astype(jnp.float32)

    const = lambda shape: pl.BlockSpec(shape, lambda i: (0, 0))

    out = pl.pallas_call(
        _mlp_kernel,
        out_shape=jax.ShapeDtypeStruct((1, Bp), jnp.float32),
        grid=(n_tiles,),
        in_specs=[
            pl.BlockSpec((tb, D_in), lambda i: (i, 0)),   # x streamed in native layout
            const((H1, D_in)),                            # w1 (resident constant block)
            const((H2, H1)),                              # w2
            const((H2, 1)),                               # w3 column
            const((H1 + H2 + 1, 1)),                      # packed biases
        ],
        out_specs=pl.BlockSpec((1, tb), lambda i: (0, i)),  # lane-dense output row
        compiler_params=pltpu.CompilerParams(
            dimension_semantics=("parallel",)),
    )(x.astype(jnp.float32), w1, w2, w3c, bias)

    # Tiny (1, Bp) slab -> public (B, 1) contract (padded lanes beyond B are sliced off;
    # they never contaminate valid lanes since every op is lane-wise in batch).
    return out[:, :B].T


def init_params(key, input_shape):
    """Deterministic init mirroring nn.Linear default (U[-1/sqrt(fan_in), +1/sqrt(fan_in)]).
    Weights in torch layout (out_features, in_features); biases (out_features,)."""
    dims = [(input_shape, 32), (32, 64), (64, 1)]
    params = []
    for i, (fan_in, fan_out) in enumerate(dims):
        kw, kb = jax.random.split(jax.random.fold_in(key, i))
        bound = 1.0 / jnp.sqrt(jnp.float32(fan_in))
        w = jax.random.uniform(kw, (fan_out, fan_in), jnp.float32, -bound, bound)
        b = jax.random.uniform(kb, (fan_out,), jnp.float32, -bound, bound)
        params += [w, b]
    return params


if __name__ == "__main__":
    key = jax.random.PRNGKey(0)
    B, D_in = 200, 16  # small synthetic batch; non-aligned B exercises the partial last tile

    kx, kp = jax.random.split(key)
    # Inputs (stand-in for StandardScaler-normalized features: ~zero mean, unit var)
    x = jax.random.normal(kx, (B, D_in), dtype=jnp.float32)

    w1, b1, w2, b2, w3, b3 = init_params(kp, D_in)

    out = jax.block_until_ready(neural_net_forward(x, w1, b1, w2, b2, w3, b3))

    # Plain-JAX reference (torch layout: y = x @ W.T + b).  HIGHEST precision so the
    # reference matmuls are true f32 (TPU's DEFAULT precision truncates operands to
    # bf16, which is what dominated the previous mismatch).
    hp = jax.lax.Precision.HIGHEST
    ref = jnp.maximum(jnp.dot(x, w1.T, precision=hp) + b1, 0.0)
    ref = jnp.maximum(jnp.dot(ref, w2.T, precision=hp) + b2, 0.0)
    ref = jax.nn.sigmoid(jnp.dot(ref, w3.T, precision=hp) + b3)

    assert out.shape == (B, 1)
    err = float(jnp.max(jnp.abs(out - ref)))
    assert jnp.allclose(out, ref, atol=1e-4, rtol=1e-4), err

    print("KERNEL_OK")
</pallas_src>

<mosaic_0001>
module attributes {stable_mosaic.version = 11 : i64} {
  func.func @_mlp_kernel(%arg0: i32, %arg1: memref<128x16xf32, #tpu.memory_space<vmem>>, %arg2: memref<32x16xf32, #tpu.memory_space<vmem>>, %arg3: memref<64x32xf32, #tpu.memory_space<vmem>>, %arg4: memref<64x1xf32, #tpu.memory_space<vmem>>, %arg5: memref<97x1xf32, #tpu.memory_space<vmem>>, %arg6: memref<1x128xf32, #tpu.memory_space<vmem>>) attributes {dimension_semantics = [#tpu.dimension_semantics<parallel>], iteration_bounds = array<i64: 2>, scalar_prefetch = 0 : i64, scratch_operands = 0 : i64, tpu.core_type = #tpu.core_type<tc>, window_params = [{transform_indices = @transform_0, window_bounds = array<i64: 128, 16>}, {pipeline_mode = #tpu.pipeline_mode<synchronous>, transform_indices = @transform_1, window_bounds = array<i64: 32, 16>}, {pipeline_mode = #tpu.pipeline_mode<synchronous>, transform_indices = @transform_2, window_bounds = array<i64: 64, 32>}, {pipeline_mode = #tpu.pipeline_mode<synchronous>, transform_indices = @transform_3, window_bounds = array<i64: 64, 1>}, {pipeline_mode = #tpu.pipeline_mode<synchronous>, transform_indices = @transform_4, window_bounds = array<i64: 97, 1>}, {transform_indices = @transform_5, window_bounds = array<i64: 1, 128>}]} {
    %c0 = arith.constant 0 : index
    %c0_0 = arith.constant 0 : index
    %0 = vector.load %arg1[%c0, %c0_0] : memref<128x16xf32, #tpu.memory_space<vmem>>, vector<128x16xf32>
    %c0_1 = arith.constant 0 : index
    %c0_2 = arith.constant 0 : index
    %1 = vector.load %arg5[%c0_1, %c0_2] : memref<97x1xf32, #tpu.memory_space<vmem>>, vector<97x1xf32>
    %c0_3 = arith.constant 0 : index
    %c0_4 = arith.constant 0 : index
    %2 = vector.load %arg2[%c0_3, %c0_4] : memref<32x16xf32, #tpu.memory_space<vmem>>, vector<32x16xf32>
    %cst = arith.constant dense<0.000000e+00> : vector<32x128xf32>
    %3 = tpu.matmul %2, %0, %cst {dimension_numbers = #tpu.dot_dimension_numbers<[1], [1], [0], [0], [0, 0, 1, 0], [], []>} : vector<32x16xf32>, vector<128x16xf32>, vector<32x128xf32> -> vector<32x128xf32>
    %4 = vector.extract_strided_slice %1 {offsets = [0, 0], sizes = [32, 1], strides = [1, 1]} : vector<97x1xf32> to vector<32x1xf32>
    %5 = vector.broadcast %4 : vector<32x1xf32> to vector<32x128xf32>
    %6 = arith.addf %3, %5 : vector<32x128xf32>
    %cst_5 = arith.constant 0.000000e+00 : f32
    %7 = vector.broadcast %cst_5 : f32 to vector<32x128xf32>
    %8 = arith.maximumf %6, %7 : vector<32x128xf32>
    %c0_6 = arith.constant 0 : index
    %c0_7 = arith.constant 0 : index
    %9 = vector.load %arg3[%c0_6, %c0_7] : memref<64x32xf32, #tpu.memory_space<vmem>>, vector<64x32xf32>
    %cst_8 = arith.constant dense<0.000000e+00> : vector<64x128xf32>
    %10 = tpu.matmul %9, %8, %cst_8 {dimension_numbers = #tpu.dot_dimension_numbers<[1], [0], [0], [1], [0, 0, 1, 1], [], []>} : vector<64x32xf32>, vector<32x128xf32>, vector<64x128xf32> -> vector<64x128xf32>
    %11 = vector.extract_strided_slice %1 {offsets = [32, 0], sizes = [64, 1], strides = [1, 1]} : vector<97x1xf32> to vector<64x1xf32>
    %12 = vector.broadcast %11 : vector<64x1xf32> to vector<64x128xf32>
    %13 = arith.addf %10, %12 : vector<64x128xf32>
    %cst_9 = arith.constant 0.000000e+00 : f32
    %14 = vector.broadcast %cst_9 : f32 to vector<64x128xf32>
    %15 = arith.maximumf %13, %14 : vector<64x128xf32>
    %c0_10 = arith.constant 0 : index
    %c0_11 = arith.constant 0 : index
    %16 = vector.load %arg4[%c0_10, %c0_11] : memref<64x1xf32, #tpu.memory_space<vmem>>, vector<64x1xf32>
    %17 = vector.broadcast %16 : vector<64x1xf32> to vector<64x128xf32>
    %18 = arith.mulf %17, %15 : vector<64x128xf32>
    %cst_12 = arith.constant dense<0.000000e+00> : vector<128xf32>
    %19 = vector.multi_reduction <add>, %18, %cst_12 [0] : vector<64x128xf32> to vector<128xf32>
    %20 = vector.shape_cast %19 : vector<128xf32> to vector<1x128xf32>
    %21 = vector.extract_strided_slice %1 {offsets = [96, 0], sizes = [1, 1], strides = [1, 1]} : vector<97x1xf32> to vector<1x1xf32>
    %22 = vector.broadcast %21 : vector<1x1xf32> to vector<1x128xf32>
    %23 = arith.addf %20, %22 : vector<1x128xf32>
    %cst_13 = arith.constant 5.000000e-01 : f32
    %24 = vector.broadcast %cst_13 : f32 to vector<1x128xf32>
    %25 = arith.mulf %24, %23 : vector<1x128xf32>
    %26 = math.tanh %25 : vector<1x128xf32>
    %cst_14 = arith.constant 1.000000e+00 : f32
    %27 = vector.broadcast %cst_14 : f32 to vector<1x128xf32>
    %28 = arith.addf %26, %27 : vector<1x128xf32>
    %cst_15 = arith.constant 5.000000e-01 : f32
    %29 = vector.broadcast %cst_15 : f32 to vector<1x128xf32>
    %30 = arith.mulf %29, %28 : vector<1x128xf32>
    %c0_16 = arith.constant 0 : index
    %c0_17 = arith.constant 0 : index
    %31 = vector.load %arg6[%c0_16, %c0_17] : memref<1x128xf32, #tpu.memory_space<vmem>>, vector<1x128xf32>
    tpu.vector_store %arg6[%c0_16, %c0_17], %30 {strides = array<i32>} : memref<1x128xf32, #tpu.memory_space<vmem>>, vector<1x128xf32>,
    return
  }
  func.func @transform_0(%arg0: i32) -> (i32, i32) {
    %c0_i32 = arith.constant 0 : i32
    %c0_i32_0 = arith.constant 0 : i32
    return %arg0, %c0_i32 : i32, i32
  }
  func.func @transform_1(%arg0: i32) -> (i32, i32) {
    %c0_i32 = arith.constant 0 : i32
    %c0_i32_0 = arith.constant 0 : i32
    %c0_i32_1 = arith.constant 0 : i32
    return %c0_i32, %c0_i32_0 : i32, i32
  }
  func.func @transform_2(%arg0: i32) -> (i32, i32) {
    %c0_i32 = arith.constant 0 : i32
    %c0_i32_0 = arith.constant 0 : i32
    %c0_i32_1 = arith.constant 0 : i32
    return %c0_i32, %c0_i32_0 : i32, i32
  }
  func.func @transform_3(%arg0: i32) -> (i32, i32) {
    %c0_i32 = arith.constant 0 : i32
    %c0_i32_0 = arith.constant 0 : i32
    %c0_i32_1 = arith.constant 0 : i32
    return %c0_i32, %c0_i32_0 : i32, i32
  }
  func.func @transform_4(%arg0: i32) -> (i32, i32) {
    %c0_i32 = arith.constant 0 : i32
    %c0_i32_0 = arith.constant 0 : i32
    %c0_i32_1 = arith.constant 0 : i32
    return %c0_i32, %c0_i32_0 : i32, i32
  }
  func.func @transform_5(%arg0: i32) -> (i32, i32) {
    %c0_i32 = arith.constant 0 : i32
    %c0_i32_0 = arith.constant 0 : i32
    return %c0_i32, %arg0 : i32, i32
  }
}

</mosaic_0001>

<bundles_post_ra>
// kernel: tpu_custom_call.1
= control target key start
LH: loop header
LB: loop body
LE: loop exit
PB: predicated region body
PF: predicated region fallthrough
CT: control target
= control target key end

     0   :  { %10 = vsyncpa [#allocation3], 0  ;;  %s1370_s0 = inlined_call_operand.vmem [shape: f32[200,16], index: 0, kind: input, shape index: {}]   ;;  %s1371_s1 = inlined_call_operand.vmem [shape: f32[32,16], index: 1, kind: input, shape index: {}]   ;;  %s1372_s2 = inlined_call_operand.vmem [shape: f32[64,32], index: 2, kind: input, shape index: {}]   ;;  %s1373_s3 = inlined_call_operand.vmem [shape: f32[64,1], index: 3, kind: input, shape index: {}]   ;;  %s1374_s4 = inlined_call_operand.vmem [shape: f32[97,1], index: 4, kind: input, shape index: {}]   ;;  %s1375_s5 = inlined_call_operand.hbm [shape: f32[1,256], index: 5, kind: output, shape index: {}]  }
   0x1   :  { %12 = vsyncpa [#allocation3 + $0x1], 0  ;;  %s1104_s18 = smov 0   ;;  %s1106_s19 = smov 0  }
   0x2   :  { %s1108_s20 = smov 0   ;;  %s1110_s21 = smov 0  }
   0x3 LB: > { %s780_s22 = sadd.s32 4294967295, %s1070_s21   ;;  %s781_s23 = sadd.s32 4294967294, %s1070_s21   ;;  %s1070_s21 = sphi %s1110_s21, %s1383_s21   ;;  %s1066_s20 = sphi %s1108_s20, %s1382_s20   ;;  %s1062_s19 = sphi %s1106_s19, %s1381_s19   ;;  %s1058_s18 = sphi %s1104_s18, %s1380_s18  }
   0x4   : > { %s1127_s24 = sadd.s32 1, %s1070_s21   ;;  %s135_s25 = sadd.s32 1, %s1066_s20 }
   0x5   : > { %s132_s26 = ssub.s32 %s1070_s21, %s1127_s24  ;;  %p145_p0 = scmp.ne.s32.totalorder %s1066_s20, %s1062_s19 }
   0x6   : > { %p133_p1 = scmp.eq.s32.totalorder %s132_s26, 0  ;;  %p146_p2 = scmp.eq.s32.totalorder %s780_s22, 1 }
   0x7   : > { %p151_p3 = scmp.ne.s32.totalorder %s1062_s19, %s1058_s18  ;;  %p152_p4 = scmp.eq.s32.totalorder %s781_s23, 1 }
   0x8   : > { %s1137_s27 = scalar_select %p133_p1, %s1066_s20, %s135_s25  }
   0x9   : > { %p1139_p5 = por %p146_p2, %p145_p0  ;;  %p1143_p6 = por %p152_p4, %p151_p3 }
   0xa   : > { %p784_p7 = scmp.ge.s32.totalorder %s1070_s21, 1  ;;  %p199_p8 = scmp.lt.s32.totalorder %s1070_s21, 3 }
   0xc   : > { %p200_p9 = pnand %p784_p7, %p199_p8 }
   0xd   : > { %s1149_s30 = sshll.u32 (!%p200_p9), %s780_s22, 4  ;;  %vm297_vm0 = vcmask (!%p200_p9), 130048   ;;  %v273_v0 = vld [vmem:[%s1371_s1] sm:$0xff] (!%p200_p9)  ;;  %v1072_v1 = vmov (!%p200_p9), 0   ;;  %v262_v3 = vld [vmem:[%s1374_s4 + $0x10] sm:$0xff] (!%p200_p9)  ;;  %v261_v4 = vld [vmem:[%s1374_s4 + $0x8] sm:$0xff] (!%p200_p9) }
   0xe   : > { %203 = sbr.rel (%p200_p9) target bundleno = 599 (0x257), region = 40  ;;  %p235_p10 = scmp.lt.s32.totalorder (!%p200_p9), %s1149_s30, 24  ;;  %882 = vmatprep.mubr.msk.f32.mxu0 (!%p200_p9), %vm297_vm0, %v273_v0  ;;  %1004 = vset.pattern.permute.xlu0 (!%p200_p9), %v1072_v1  ;;  %v260_v2 = vld [vmem:[%s1374_s4] sm:$0xff] (!%p200_p9)  ;;  %v263_v5 = vld [vmem:[%s1374_s4 + $0x18] sm:$0xff] (!%p200_p9)  ;;  %vm1176_vm1 = vmpackc.low (!%p200_p9), %vm297_vm0, %vm297_vm0  ;;  %vm495_vm2 = vcmask (!%p200_p9), 261120  }
   0xf   : > { %279 = vperm.xlu0 (!%p200_p9), %1004, %v260_v2   ;;  %1005 = vset.pattern.permute.xlu1 (!%p200_p9), %v1072_v1  ;;  %v264_v7 = vld [vmem:[%s1374_s4 + $0x20] sm:$0xff] (!%p200_p9)  ;;  %v265_v13 = vld [vmem:[%s1374_s4 + $0x28] sm:$0xff] (!%p200_p9)  ;;  %v266_v15 = vld [vmem:[%s1374_s4 + $0x30] sm:$0xff] (!%p200_p9)  ;;  %s228_s14 = sand.u32 (!%p200_p9), 1, %s1062_s19   ;;  %s1328_s23 = scalar_lea.hbm (!%p200_p9), %s1375_s5, %s1149_s30 }
  0x10   : > { %289 = vperm.xlu1 (!%p200_p9), %1005, %v262_v3   ;;  %v267_v16 = vld [vmem:[%s1374_s4 + $0x38] sm:$0xff] (!%p200_p9)  ;;  %v633_v19 = vld [vmem:[%s1373_s3] sm:$0xff] (!%p200_p9)  ;;  %v634_v21 = vld [vmem:[%s1373_s3 + $0x8] sm:$0xff] (!%p200_p9)  ;;  %s229_s15 = scalar_lea.vmem (!%p200_p9), [#allocation2], %s228_s14  ;;  %s714_s26 = scalar_lea.sflag (!%p200_p9), [#allocation3], %s228_s14 }
  0x11   : > { %v268_v22 = vld [vmem:[%s1374_s4 + $0x40] sm:$0xff] (!%p200_p9)  ;;  %v635_v23 = vld [vmem:[%s1373_s3 + $0x10] sm:$0xff] (!%p200_p9)  ;;  %v269_v26 = vld [vmem:[%s1374_s4 + $0x48] sm:$0xff] (!%p200_p9)  ;;  %s726_s16 = sshll.u32 (!%p200_p9), %s229_s15, 4  ;;  %s1073_s7 = smov (!%p200_p9), [#allocation2]   ;;  %s1330_s16 = int_to_ptr.vmem [resolvable:$true] %s726_s16 }
  0x12   : > { %v636_v28 = vld [vmem:[%s1373_s3 + $0x18] sm:$0xff] (!%p200_p9)  ;;  %v270_v29 = vld [vmem:[%s1374_s4 + $0x50] sm:$0xff] (!%p200_p9)  ;;  %v637_v30 = vld [vmem:[%s1373_s3 + $0x20] sm:$0xff] (!%p200_p9)  ;;  %s1008_s6 = scalar_lea.vmem (!%p200_p9), %s1330_s16, 16  ;;  %s1012_s8 = sshll.u32 (!%p200_p9), %s1073_s7, 4  ;;  %s1013_s8 = int_to_ptr.vmem [resolvable:$false] %s1012_s8 }
  0x13   : > { %284 = vperm.xlu0 (!%p200_p9), %1004, %v261_v4   ;;  %v271_v33 = vld [vmem:[%s1374_s4 + $0x58] sm:$0xff] (!%p200_p9)  ;;  %v638_v35 = vld [vmem:[%s1373_s3 + $0x28] sm:$0xff] (!%p200_p9)  ;;  %v639_v36 = vld [vmem:[%s1373_s3 + $0x30] sm:$0xff] (!%p200_p9)  ;;  %p1009_p11 = scmp.ne.s32.totalorder (!%p200_p9), %s1330_s16, %s1008_s6  ;;  %s1014_s9 = scalar_lea.vmem (!%p200_p9), %s1013_s8, 32 }
  0x14   : > { %294 = vperm.xlu1 (!%p200_p9), %1005, %v263_v5   ;;  %v640_v37 = vld [vmem:[%s1373_s3 + $0x38] sm:$0xff] (!%p200_p9)  ;;  %v272_v40 = vld [vmem:[%s1374_s4 + $0x60] sm:$0x1] (!%p200_p9)  ;;  %v274_v48 = vld [vmem:[%s1371_s1 + $0x8] sm:$0xff] (!%p200_p9)  ;;  %p1015_p0 = scmp.lt.s32.totalorder (!%p200_p9), %s1330_s16, %s1013_s8  ;;  %p1016_p1 = scmp.lt.s32.totalorder (!%p200_p9), %s1014_s9, %s1008_s6 }
  0x15   : > { %s236_s12 = scalar_select %p235_p10, %s1149_s30, 24  ;;  %v275_v49 = vld [vmem:[%s1371_s1 + $0x10] sm:$0xff]  ;;  %v276_v50 = vld [vmem:[%s1371_s1 + $0x18] sm:$0xff]  ;;  %v447_v51 = vld [vmem:[%s1372_s2] sm:$0xff] }
  0x16   : > { %896 = vmatprep.mubr.msk.f32.mxu1 %vm495_vm2, %v447_v51  ;;  %v448_v6 = vld [vmem:[%s1372_s2 + $0x8] sm:$0xff]  ;;  %p1010_p12 = pnand %p1009_p11, %p1139_p5  ;;  %p1017_p2 = por %p1016_p1, %p1015_p0 }
  0x17   : > { %s786_s17 = sshll.u32 %s236_s12, 3  ;;  %457 = vperm.xlu0 %1004, %v264_v7   ;;  %v449_v7 = vld [vmem:[%s1372_s2 + $0x10] sm:$0xff] }
  0x18   : > { %s1172_s25 = scalar_lea.vmem %s1370_s0, %s786_s17  ;;  %462 = vperm.xlu1 %1005, %v265_v13   ;;  %p1011_p13 = pneg %p1010_p12 }
  0x19   : > { %v244_v8 = vld [vmem:[%s1172_s25] sm:$0xff]  ;;  %v245_v9 = vld [vmem:[%s1172_s25 + $0x8] sm:$0xff]  ;;  %v246_v10 = vld [vmem:[%s1172_s25 + $0x10] sm:$0xff] }
  0x1a   : > { %v908_v11 = vpack.c.bf16 %v245_v9, %v244_v8  ;;  %v247_v12 = vld [vmem:[%s1172_s25 + $0x18] sm:$0xff]  ;;  %v248_v17 = vld [vmem:[%s1172_s25 + $0x20] sm:$0xff]  ;;  %v249_v18 = vld [vmem:[%s1172_s25 + $0x28] sm:$0xff]  ;;  %p1018_p3 = pnand %p1017_p2, %p1011_p13 }
  0x1b   : > { %v914_v14 = vpack.c.bf16 %v247_v12, %v246_v10  ;;  %467 = vperm.xlu0 %1004, %v266_v15   ;;  %v920_v20 = vpack.c.bf16 %v249_v18, %v248_v17  ;;  %v250_v24 = vld [vmem:[%s1172_s25 + $0x30] sm:$0xff]  ;;  %v251_v25 = vld [vmem:[%s1172_s25 + $0x38] sm:$0xff]  ;;  %v252_v31 = vld [vmem:[%s1172_s25 + $0x40] sm:$0xff] }
  0x1c   : > { %910 = vmatprep.subr.msk.bf16.mxu0 %vm1176_vm1, %v908_v11  ;;  %472 = vperm.xlu1 %1005, %v267_v16   ;;  %v926_v27 = vpack.c.bf16 %v251_v25, %v250_v24  ;;  %v253_v32 = vld [vmem:[%s1172_s25 + $0x48] sm:$0xff]  ;;  %v254_v38 = vld [vmem:[%s1172_s25 + $0x50] sm:$0xff]  ;;  %v255_v39 = vld [vmem:[%s1172_s25 + $0x58] sm:$0xff] }
  0x1d   : > { %913 = vmatpush3.bf16.xpose.msk.msra.mxu0 %vm1176_vm1, %v908_v11  ;;  %v932_v34 = vpack.c.bf16 %v253_v32, %v252_v31  ;;  %v938_v41 = vpack.c.bf16 %v255_v39, %v254_v38  ;;  %v256_v42 = vld [vmem:[%s1172_s25 + $0x60] sm:$0xff]  ;;  %v257_v43 = vld [vmem:[%s1172_s25 + $0x68] sm:$0xff]  ;;  %v258_v45 = vld [vmem:[%s1172_s25 + $0x70] sm:$0xff] }
  0x1e   : > { %916 = vmatprep.subr.msk.bf16.mxu0 %vm1176_vm1, %v914_v14  ;;  %v944_v44 = vpack.c.bf16 %v257_v43, %v256_v42  ;;  %v259_v46 = vld [vmem:[%s1172_s25 + $0x78] sm:$0xff]  ;;  %v451_v9 = vld [vmem:[%s1372_s2 + $0x20] sm:$0xff]  ;;  %v452_v10 = vld [vmem:[%s1372_s2 + $0x28] sm:$0xff] }
  0x1f   : > { %643 = vperm.xlu0 %1004, %v633_v19   ;;  %v950_v47 = vpack.c.bf16 %v259_v46, %v258_v45  ;;  %v450_v8 = vld [vmem:[%s1372_s2 + $0x18] sm:$0xff]  ;;  %v453_v11 = vld [vmem:[%s1372_s2 + $0x30] sm:$0xff] }
  0x20   : > { %648 = vperm.xlu1 %1005, %v634_v21   ;;  %v454_v12 = vld [vmem:[%s1372_s2 + $0x38] sm:$0xff] }
  0x23   : > { %477 = vperm.xlu0 %1004, %v268_v22  }
  0x24   : > { %653 = vperm.xlu1 %1005, %v635_v23  }
  0x25   : > { %919 = vmatpush3.bf16.xpose.msk.msra.mxu0 %vm1176_vm1, %v914_v14 }
  0x26   : > { %922 = vmatprep.subr.msk.bf16.mxu0 %vm1176_vm1, %v920_v20 }
  0x27   : > { %482 = vperm.xlu0 %1004, %v269_v26  }
  0x28   : > { %658 = vperm.xlu1 %1005, %v636_v28  }
  0x2b   : > { %487 = vperm.xlu0 %1004, %v270_v29  }
  0x2c   : > { %663 = vperm.xlu1 %1005, %v637_v30  }
  0x2d   : > { %925 = vmatpush3.bf16.xpose.msk.msra.mxu0 %vm1176_vm1, %v920_v20 }
  0x2e   : > { %928 = vmatprep.subr.msk.bf16.mxu0 %vm1176_vm1, %v926_v27 }
  0x2f   : > { %492 = vperm.xlu0 %1004, %v271_v33  }
  0x30   : > { %668 = vperm.xlu1 %1005, %v638_v35  }
  0x33   : > { %673 = vperm.xlu0 %1004, %v639_v36  }
  0x34   : > { %678 = vperm.xlu1 %1005, %v640_v37  }
  0x35   : > { %931 = vmatpush3.bf16.xpose.msk.msra.mxu0 %vm1176_vm1, %v926_v27 }
  0x36   : > { %934 = vmatprep.subr.msk.bf16.mxu0 %vm1176_vm1, %v932_v34 }
  0x37   : > { %704 = vperm.xlu0 %1004, %v272_v40  }
  0x3d   : > { %937 = vmatpush3.bf16.xpose.msk.msra.mxu0 %vm1176_vm1, %v932_v34 }
  0x3e   : > { %940 = vmatprep.subr.msk.bf16.mxu0 %vm1176_vm1, %v938_v41 }
  0x45   : > { %943 = vmatpush3.bf16.xpose.msk.msra.mxu0 %vm1176_vm1, %v938_v41 }
  0x46   : > { %946 = vmatprep.subr.msk.bf16.mxu0 %vm1176_vm1, %v944_v44 }
  0x4d   : > { %949 = vmatpush3.bf16.xpose.msk.msra.mxu0 %vm1176_vm1, %v944_v44 }
  0x4e   : > { %952 = vmatprep.subr.msk.bf16.mxu0 %vm1176_vm1, %v950_v47 }
  0x55   : > { %955 = vmatpush3.bf16.xpose.msk.msra.mxu0 %vm1176_vm1, %v950_v47 }
  0x5c   : > { %883 = vmatmul.mubr.msk.f32.vlgmr.msra.gmra.mrb[0].mxu0 %vm297_vm0, %v274_v48 }
  0x5d   : > { %885 = vmatprep.mubr.msk.f32.mxu0 %vm297_vm0, %v275_v49 }
  0x60   : > { %886 = vmatmul.mubr.msk.f32.gmra.mrb[2].mxu0 %vm297_vm0, %v276_v50 }
  0x8e   : > { %v280_v52 = vpop.permute.xlu0 %279 }
  0x8f   : > { %v290_v53 = vpop.permute.xlu1 %289 }
  0x92   : > { %v285_v54 = vpop.permute.xlu0 %284 }
  0x93   : > { %v295_v60 = vpop.permute.xlu1 %294 }
  0x96   : > { %v458_v13 = vpop.permute.xlu0 %457 }
  0x97   : > { %v463_v14 = vpop.permute.xlu1 %462 }
  0x9a   : > { %v468_v15 = vpop.permute.xlu0 %467 }
  0x9b   : > { %v473_v16 = vpop.permute.xlu1 %472 }
  0x9e   : > { %v644_v17 = vpop.permute.xlu0 %643 }
  0x9f   : > { %v649_v18 = vpop.permute.xlu1 %648 }
  0xa2   : > { %v478_v19 = vpop.permute.xlu0 %477 }
  0xa3   : > { %v654_v20 = vpop.permute.xlu1 %653 }
  0xa6   : > { %v483_v21 = vpop.permute.xlu0 %482 }
  0xa7   : > { %v659_v23 = vpop.permute.xlu1 %658 }
  0xaa   : > { %v488_v30 = vpop.permute.xlu0 %487 }
  0xab   : > { %v664_v36 = vpop.permute.xlu1 %663 }
  0xae   : > { %v493_v45 = vpop.permute.xlu0 %492 }
  0xaf   : > { %v669_v51 = vpop.permute.xlu1 %668 }
 0x12f   : > { %v884_v55 = vpop.f32.mrb[0].mxu0 }
 0x130   : > { %v430_v56 = vadd.f32 %v884_v55, %v285_v54  ;;  %v424_v57 = vpop.f32.mrb[1].mxu0 }
 0x131   : > { %v425_v58 = vadd.f32 %v424_v57, %v280_v52 }
 0x132   : > { %v444_v59 = vmax.f32 %v430_v56, 0.0 }
 0x133   : > { %v443_v61 = vmax.f32 %v425_v58, 0.0  ;;  %v887_v62 = vpop.f32.mrb[2].mxu0 }
 0x134   : > { %v440_v63 = vadd.f32 %v887_v62, %v295_v60  ;;  %v434_v0 = vpop.f32.mrb[3].mxu0 }
 0x135   : > { %v435_v1 = vadd.f32 %v434_v0, %v290_v53  ;;  %v956_v2 = vpack.c.bf16 %v444_v59, %v443_v61  ;;  %v674_v61 = vpop.permute.xlu0 %673  ;;  %v679_v0 = vpop.permute.xlu1 %678 }
 0x136   : > { %v446_v3 = vmax.f32 %v440_v63, 0.0 }
 0x137   : > { %v445_v4 = vmax.f32 %v435_v1, 0.0  ;;  %957 = vmatprep.subr.bf16.mxu1 %v956_v2 }
 0x138   : > { %959 = vmatpush3.bf16.msra.mxu1 %v956_v2 }
 0x139   : > { %v960_v5 = vpack.c.bf16 %v446_v3, %v445_v4 }
 0x13b   : > { %961 = vmatprep.subr.bf16.mxu1 %v960_v5 }
 0x13c   : > { %963 = vmatpush3.bf16.msra.mxu1 %v960_v5 }
 0x13f   : > { %897 = vmatmul.mubr.msk.f32.vlgmr.msra.gmra.mrb[0].mxu1 %vm495_vm2, %v448_v6 }
 0x140   : > { %899 = vmatprep.mubr.msk.f32.mxu1 %vm495_vm2, %v449_v7 }
 0x143   : > { %900 = vmatmul.mubr.msk.f32.gmra.mrb[2].mxu1 %vm495_vm2, %v450_v8 }
 0x144   : > { %902 = vmatprep.mubr.msk.f32.mxu1 %vm495_vm2, %v451_v9 }
 0x147   : > { %903 = vmatmul.mubr.msk.f32.gmra.mrb[4].mxu1 %vm495_vm2, %v452_v10  ;;  %v705_v10 = vpop.permute.xlu0 %704 }
 0x148   : > { %905 = vmatprep.mubr.msk.f32.mxu1 %vm495_vm2, %v453_v11 }
 0x14b   : > { %906 = vmatmul.mubr.msk.f32.gmra.mrb[6].mxu1 %vm495_vm2, %v454_v12 }
 0x212   : > { %v898_v22 = vpop.f32.mrb[0].mxu1 }
 0x213   : > { %v592_v24 = vadd.f32 %v898_v22, %v463_v14  ;;  %v586_v25 = vpop.f32.mrb[1].mxu1 }
 0x214   : > { %v587_v26 = vadd.f32 %v586_v25, %v458_v13 }
 0x215   : > { %v626_v27 = vmax.f32 %v592_v24, 0.0 }
 0x216   : > { %v625_v28 = vmax.f32 %v587_v26, 0.0  ;;  %v901_v29 = vpop.f32.mrb[2].mxu1 }
 0x217   : > { %v682_v31 = vmul.f32 %v649_v18, %v626_v27  ;;  %v602_v32 = vadd.f32 %v901_v29, %v473_v16  ;;  %v596_v33 = vpop.f32.mrb[3].mxu1 }
 0x218   : > { %v681_v34 = vmul.f32 %v644_v17, %v625_v28  ;;  %v597_v35 = vadd.f32 %v596_v33, %v468_v15 }
 0x219   : > { %v628_v38 = vmax.f32 %v602_v32, 0.0 }
 0x21a   : > { %v689_v37 = vadd.f32 %v682_v31, %v681_v34  ;;  %v627_v39 = vmax.f32 %v597_v35, 0.0  ;;  %v904_v40 = vpop.f32.mrb[4].mxu1 }
 0x21b   : > { %v612_v41 = vadd.f32 %v904_v40, %v483_v21  ;;  %v606_v42 = vpop.f32.mrb[5].mxu1  ;;  %v684_v46 = vmul.f32 %v659_v23, %v628_v38 }
 0x21c   : > { %v683_v43 = vmul.f32 %v654_v20, %v627_v39  ;;  %v607_v44 = vadd.f32 %v606_v42, %v478_v19 }
 0x21d   : > { %v630_v48 = vmax.f32 %v612_v41, 0.0 }
 0x21e   : > { %v690_v47 = vadd.f32 %v689_v37, %v683_v43  ;;  %v629_v49 = vmax.f32 %v607_v44, 0.0  ;;  %v907_v50 = vpop.f32.mrb[6].mxu1 }
 0x21f   : > { %v622_v52 = vadd.f32 %v907_v50, %v493_v45  ;;  %v616_v53 = vpop.f32.mrb[7].mxu1  ;;  %v686_v57 = vmul.f32 %v669_v51, %v630_v48 }
 0x220   : > { %v685_v54 = vmul.f32 %v664_v36, %v629_v49  ;;  %v691_v55 = vadd.f32 %v690_v47, %v684_v46  ;;  %v617_v56 = vadd.f32 %v616_v53, %v488_v30 }
 0x221   : > { %v632_v59 = vmax.f32 %v622_v52, 0.0 }
 0x222   : > { %v692_v58 = vadd.f32 %v691_v55, %v685_v54  ;;  %v631_v60 = vmax.f32 %v617_v56, 0.0 }
 0x223   : > { %v688_v1 = vmul.f32 %v679_v0, %v632_v59 }
 0x224   : > { %v687_v62 = vmul.f32 %v674_v61, %v631_v60  ;;  %v693_v63 = vadd.f32 %v692_v58, %v686_v57 }
 0x226   : > { %v694_v2 = vadd.f32 %v693_v63, %v687_v62 }
 0x228   : > { %v695_v3 = vadd.f32 %v694_v2, %v688_v1 }
 0x22a   : > { %v696_v4 = vrot.slane %v695_v3, 4 }
 0x22c   : > { %v697_v5 = vadd.f32 %v696_v4, %v695_v3 }
 0x22e   : > { %v698_v6 = vrot.slane %v697_v5, 2 }
 0x230   : > { %v699_v7 = vadd.f32 %v698_v6, %v697_v5 }
 0x232   : > { %v700_v8 = vrot.slane %v699_v7, 1 }
 0x234   : > { %v701_v9 = vadd.f32 %v700_v8, %v699_v7 }
 0x236   : > { %v707_v11 = vadd.f32 %v705_v10, %v701_v9 }
 0x238   : > { %v708_v12 = vmul.f32 0.5, %v707_v11 }
 0x23a   : > { %1006 = vtanh.f32 %v708_v12 }
 0x244   : > { %v1007_v13 = vpop.eup %1006 }
 0x245   : > { %v710_v14 = vadd.f32 1.0, %v1007_v13 }
 0x247   : > { %v711_v15 = vmul.f32 0.5, %v710_v14 }
 0x249   : > { %712 = vst [vmem:[%s229_s15] sm:$0x1] %v711_v15 }
 0x24a   : > { %1021 = shalt.err (!%p1018_p3)
}
 0x24b   : > { %s1022_s30 = scalar_lea.hbm %s1328_s23, 16  ;;  %s1026_s12 = scalar_lea.hbm %s1375_s5, 32 }
 0x24c   : > { %p1023_p4 = scmp.ne.s32.totalorder %s1328_s23, %s1022_s30  ;;  %p1027_p9 = scmp.lt.u32.totalorder %s1328_s23, %s1375_s5 }
 0x24d   : > { %p1028_p10 = scmp.lt.u32.totalorder %s1026_s12, %s1022_s30  ;;  %p1030_p12 = scmp.lt.u32.totalorder %s1022_s30, %s1328_s23 }
 0x24e   : > { %p1024_p7 = pnand %p1023_p4, %p1139_p5 }
 0x24f   : > { %p1029_p11 = por %p1028_p10, %p1027_p9 }
 0x250   : > { %p1025_p8 = pneg %p1024_p7 }
 0x251   : > { %p1031_p13 = por %p1030_p12, %p1029_p11 }
 0x253   : > { %p1032_p0 = pnand %p1031_p13, %p1025_p8 }
 0x255   : > { %1035 = shalt.err (!%p1032_p0)
}
 0x256   : > { %964 = dma.vmem_to_hbm [thread:$0]  (%p1139_p5), %s1330_s16, 16, %s1328_s23, %s714_s26  }
 0x257 PF: > { %p970_p1 = scmp.ge.s32.totalorder %s1070_s21, 2  ;;  %s738_s14 = sand.u32 1, %s1058_s18  }
 0x258   : > { %s739_s15 = scalar_lea.sflag [#allocation3], %s738_s14 }
 0x259   : > { %p967_p2 = pnand %p970_p1, %p1143_p6 }
 0x25b   : > { %1053 = dma.done.wait (!%p967_p2), %s739_s15, 16  }
 0x25c   : > { %1055 = vsyncadd (!%p967_p2), %s739_s15, 4294967280  ;;  %p15_p3 = scmp.ge.s32.totalorder %s1127_s24, 4   ;;  %s1380_s18 = smov %s1062_s19 }
 0x25d   : > { %s1381_s19 = smov %s1066_s20  ;;  %s1382_s20 = smov %s1137_s27 }
 0x25e   : > { %s1383_s21 = smov %s1127_s24  ;;  %17 = sbr.rel (!%p15_p3) target bundleno = 3 (0x3), region = 75 }
 0x265   :  { %743 = vsyncpa [#allocation3], 1 }
 0x266   :  { %745 = vsyncpa [#allocation3 + $0x1], 1 }

</bundles_post_ra>
